<compile_context>
chip_gen: v6e
topology: v6e:2x2x1
jax: 0.10.0
libtpu: 0.0.40
codegen_flags: <defaults>
</compile_context>

<pallas_src>
import jax
import jax.numpy as jnp
from jax.experimental import pallas as pl
from jax.experimental.pallas import tpu as pltpu


def _round_up(n, m):
    return ((n + m - 1) // m) * m


def _logreg_kernel(x_ref, wt_ref, b_ref, o_ref):
    # logits = x_tile @ W_t -> (tb, C); x is the MXU-native LHS, K=120 is
    # padded/masked internally by Mosaic (logical shapes drive the matmul).
    logits = jnp.dot(x_ref[...], wt_ref[...],
                     preferred_element_type=jnp.float32)
    logits = logits + b_ref[...]              # (1, C) broadcast over rows

    # Numerically stable log_softmax over the class axis (last dim, C=2).
    # Per-row reductions: garbage rows of a partial last tile cannot leak
    # into valid rows, and their stores are dropped by Pallas.
    m = jnp.max(logits, axis=-1, keepdims=True)
    shifted = logits - m
    lse = jnp.log(jnp.sum(jnp.exp(shifted), axis=-1, keepdims=True))
    o_ref[...] = (shifted - lse).astype(o_ref.dtype)


def logistic_regression_forward(x, w, b, *, tb=8192):
    """log_softmax(x @ w.T + b, axis=1).

    x: (B, F) float32
    w: (C, F) float32  (native nn.Linear layout: (out_features, in_features))
    b: (C,)   float32
    returns (B, C) float32
    """
    B, F = x.shape
    C, F2 = w.shape
    assert F == F2 and b.shape == (C,)

    # Batch tile: multiple of 8 (sublane), capped near B so tiny batches don't
    # allocate huge blocks. No padding of x/B — grid handles the ragged tile.
    tb = max(8, min(tb, _round_up(B, 8)))
    num_tiles = pl.cdiv(B, tb)

    w_t = w.T.astype(jnp.float32)             # (F, C): one-time tiny transpose
    b2d = b.reshape(1, C).astype(jnp.float32)

    cost = pl.CostEstimate(
        flops=2 * B * F * C + 6 * B * C,
        transcendentals=B * (C + 1),
        bytes_accessed=4 * (B * F + F * C + C + B * C),
    )

    out = pl.pallas_call(
        _logreg_kernel,
        out_shape=jax.ShapeDtypeStruct((B, C), jnp.float32),
        grid_spec=pltpu.PrefetchScalarGridSpec(
            num_scalar_prefetch=0,
            grid=(num_tiles,),
            in_specs=[
                pl.BlockSpec((tb, F), lambda i: (i, 0)),   # x: streamed, unpadded
                pl.BlockSpec((F, C), lambda i: (0, 0)),    # W^T: VMEM-resident
                pl.BlockSpec((1, C), lambda i: (0, 0)),    # bias: VMEM-resident
            ],
            out_specs=pl.BlockSpec((tb, C), lambda i: (i, 0)),
        ),
        compiler_params=pltpu.CompilerParams(
            dimension_semantics=("parallel",)),
        cost_estimate=cost,
    )(x, w_t, b2d)

    return out


def _reference(x, w, b):
    return jax.nn.log_softmax(x @ w.T + b, axis=1)


if __name__ == "__main__":
    in_features = 120
    n_classes = 2

    key = jax.random.PRNGKey(0)
    kx, kw, kb, kx2 = jax.random.split(key, 4)

    # nn.Linear-shaped parameters: weight (out, in), bias (out,)
    w = jax.random.normal(kw, (n_classes, in_features), dtype=jnp.float32) * 0.1
    b = jax.random.normal(kb, (n_classes,), dtype=jnp.float32) * 0.1

    # Small-batch check (module-consistent shapes), single tile.
    x = jax.random.normal(kx, (8, in_features), dtype=jnp.float32)
    out = jax.block_until_ready(logistic_regression_forward(x, w, b))
    assert out.shape == (8, n_classes)
    assert jnp.allclose(out, _reference(x, w, b), atol=1e-5, rtol=1e-5)

    # Multi-tile check: exercises the batch grid + ragged last tile
    # (300 = 2 full 128-row tiles + one 44-row partial tile).
    x2 = jax.random.normal(kx2, (300, in_features), dtype=jnp.float32)
    out2 = jax.block_until_ready(logistic_regression_forward(x2, w, b, tb=128))
    assert out2.shape == (300, n_classes)
    assert jnp.allclose(out2, _reference(x2, w, b), atol=1e-5, rtol=1e-5)

    print("KERNEL_OK")
</pallas_src>

<mosaic_0001>
module attributes {stable_mosaic.version = 11 : i64} {
  func.func @_logreg_kernel(%arg0: i32, %arg1: memref<8x120xf32, #tpu.memory_space<vmem>>, %arg2: memref<120x2xf32, #tpu.memory_space<vmem>>, %arg3: memref<1x2xf32, #tpu.memory_space<vmem>>, %arg4: memref<8x2xf32, #tpu.memory_space<vmem>>) attributes {dimension_semantics = [#tpu.dimension_semantics<parallel>], iteration_bounds = array<i64: 1>, scalar_prefetch = 0 : i64, scratch_operands = 0 : i64, tpu.core_type = #tpu.core_type<tc>, window_params = [{transform_indices = @transform_0, window_bounds = array<i64: 8, 120>}, {pipeline_mode = #tpu.pipeline_mode<synchronous>, transform_indices = @transform_1, window_bounds = array<i64: 120, 2>}, {pipeline_mode = #tpu.pipeline_mode<synchronous>, transform_indices = @transform_2, window_bounds = array<i64: 1, 2>}, {transform_indices = @transform_3, window_bounds = array<i64: 8, 2>}]} {
    %c0 = arith.constant 0 : index
    %c0_0 = arith.constant 0 : index
    %0 = vector.load %arg1[%c0, %c0_0] : memref<8x120xf32, #tpu.memory_space<vmem>>, vector<8x120xf32>
    %c0_1 = arith.constant 0 : index
    %c0_2 = arith.constant 0 : index
    %1 = vector.load %arg2[%c0_1, %c0_2] : memref<120x2xf32, #tpu.memory_space<vmem>>, vector<120x2xf32>
    %cst = arith.constant dense<0.000000e+00> : vector<8x2xf32>
    %2 = tpu.matmul %0, %1, %cst {dimension_numbers = #tpu.dot_dimension_numbers<[1], [0], [0], [1], [0, 0, 1, 1], [], []>} : vector<8x120xf32>, vector<120x2xf32>, vector<8x2xf32> -> vector<8x2xf32>
    %c0_3 = arith.constant 0 : index
    %c0_4 = arith.constant 0 : index
    %3 = vector.load %arg3[%c0_3, %c0_4] : memref<1x2xf32, #tpu.memory_space<vmem>>, vector<1x2xf32>
    %4 = vector.broadcast %3 : vector<1x2xf32> to vector<8x2xf32>
    %5 = arith.addf %2, %4 : vector<8x2xf32>
    %cst_5 = arith.constant dense<0xFF800000> : vector<8xf32>
    %6 = vector.multi_reduction <maximumf>, %5, %cst_5 [1] : vector<8x2xf32> to vector<8xf32>
    %7 = vector.shape_cast %6 : vector<8xf32> to vector<8x1xf32>
    %8 = vector.broadcast %7 : vector<8x1xf32> to vector<8x2xf32>
    %9 = arith.subf %5, %8 : vector<8x2xf32>
    %10 = math.exp %9 : vector<8x2xf32>
    %cst_6 = arith.constant dense<0.000000e+00> : vector<8xf32>
    %11 = vector.multi_reduction <add>, %10, %cst_6 [1] : vector<8x2xf32> to vector<8xf32>
    %12 = vector.shape_cast %11 : vector<8xf32> to vector<8x1xf32>
    %13 = math.log %12 : vector<8x1xf32>
    %14 = vector.broadcast %13 : vector<8x1xf32> to vector<8x2xf32>
    %15 = arith.subf %9, %14 : vector<8x2xf32>
    %c0_7 = arith.constant 0 : index
    %c0_8 = arith.constant 0 : index
    %16 = vector.load %arg4[%c0_7, %c0_8] : memref<8x2xf32, #tpu.memory_space<vmem>>, vector<8x2xf32>
    tpu.vector_store %arg4[%c0_7, %c0_8], %15 {strides = array<i32>} : memref<8x2xf32, #tpu.memory_space<vmem>>, vector<8x2xf32>,
    return
  }
  func.func @transform_0(%arg0: i32) -> (i32, i32) {
    %c0_i32 = arith.constant 0 : i32
    %c0_i32_0 = arith.constant 0 : i32
    return %arg0, %c0_i32 : i32, i32
  }
  func.func @transform_1(%arg0: i32) -> (i32, i32) {
    %c0_i32 = arith.constant 0 : i32
    %c0_i32_0 = arith.constant 0 : i32
    %c0_i32_1 = arith.constant 0 : i32
    return %c0_i32, %c0_i32_0 : i32, i32
  }
  func.func @transform_2(%arg0: i32) -> (i32, i32) {
    %c0_i32 = arith.constant 0 : i32
    %c0_i32_0 = arith.constant 0 : i32
    %c0_i32_1 = arith.constant 0 : i32
    return %c0_i32, %c0_i32_0 : i32, i32
  }
  func.func @transform_3(%arg0: i32) -> (i32, i32) {
    %c0_i32 = arith.constant 0 : i32
    %c0_i32_0 = arith.constant 0 : i32
    return %arg0, %c0_i32 : i32, i32
  }
}

</mosaic_0001>

<bundles_post_ra>
// kernel: tpu_custom_call.1
= control target key start
LH: loop header
LB: loop body
LE: loop exit
PB: predicated region body
PF: predicated region fallthrough
CT: control target
= control target key end

     0   :  { %v186_v0 = vmov 0.0   ;;  %vm187_vm0 = vmmov 0   ;;  %vm37_vm1 = vcmask 982016   ;;  %vm111_vm2 = vcmask 15360   ;;  %s265_s1 = inlined_call_operand.vmem [shape: f32[120,2], index: 1, kind: input, shape index: {}]   ;;  %s266_s0 = inlined_call_operand.vmem [shape: f32[8,120], index: 0, kind: input, shape index: {}]   ;;  %s267_s2 = inlined_call_operand.vmem [shape: f32[1,2], index: 2, kind: input, shape index: {}]   ;;  %s268_s3 = inlined_call_operand.vmem [shape: f32[8,2], index: 3, kind: output, shape index: {}]  }
   0x1   :  { %147 = vmatprep.subr.mxu0 %v186_v0  ;;  %v29_v1 = vld [vmem:[%s265_s1 + $0x70] sm:$0xff]  ;;  %v28_v2 = vld [vmem:[%s265_s1 + $0x68] sm:$0xff]  ;;  %177 = vmatprep.mubr.msk.f32.mxu0 %vm187_vm0, %v186_v0  ;;  %v27_v3 = vld [vmem:[%s265_s1 + $0x60] sm:$0xff] }
   0x2   :  { %148 = vmatpush3.msra.mxu0 %v29_v1  ;;  %v26_v4 = vld [vmem:[%s265_s1 + $0x58] sm:$0xff]  ;;  %v25_v5 = vld [vmem:[%s265_s1 + $0x50] sm:$0xff]  ;;  %v24_v6 = vld [vmem:[%s265_s1 + $0x48] sm:$0xff] }
   0x3   :  { %149 = vmatprep.subr.mxu0 %v186_v0  ;;  %v23_v7 = vld [vmem:[%s265_s1 + $0x40] sm:$0xff]  ;;  %v22_v8 = vld [vmem:[%s265_s1 + $0x38] sm:$0xff]  ;;  %v21_v9 = vld [vmem:[%s265_s1 + $0x30] sm:$0xff] }
   0x4   :  { %150 = vmatpush3.msra.mxu0 %v28_v2  ;;  %v20_v10 = vld [vmem:[%s265_s1 + $0x28] sm:$0xff]  ;;  %v19_v11 = vld [vmem:[%s265_s1 + $0x20] sm:$0xff]  ;;  %v18_v12 = vld [vmem:[%s265_s1 + $0x18] sm:$0xff] }
   0x5   :  { %151 = vmatprep.subr.mxu0 %v186_v0  ;;  %v17_v13 = vld [vmem:[%s265_s1 + $0x10] sm:$0xff]  ;;  %v16_v14 = vld [vmem:[%s265_s1 + $0x8] sm:$0xff]  ;;  %v15_v15 = vld [vmem:[%s265_s1] sm:$0xff] }
   0x6   :  { %152 = vmatpush3.msra.mxu0 %v27_v3  ;;  %v14_v16 = vld [vmem:[%s266_s0] sm:$0xff] }
   0x7   :  { %153 = vmatprep.subr.mxu0 %v186_v0  ;;  %v129_v17 = vld [vmem:[%s267_s2] ss:$0 sm:$0xff] }
   0x8   :  { %154 = vmatpush3.msra.mxu0 %v26_v4 }
   0x9   :  { %155 = vmatprep.subr.mxu0 %v186_v0 }
   0xa   :  { %156 = vmatpush3.msra.mxu0 %v25_v5 }
   0xb   :  { %157 = vmatprep.subr.mxu0 %v186_v0 }
   0xc   :  { %158 = vmatpush3.msra.mxu0 %v24_v6 }
   0xd   :  { %159 = vmatprep.subr.mxu0 %v186_v0 }
   0xe   :  { %160 = vmatpush3.msra.mxu0 %v23_v7 }
   0xf   :  { %161 = vmatprep.subr.mxu0 %v186_v0 }
  0x10   :  { %162 = vmatpush3.msra.mxu0 %v22_v8 }
  0x11   :  { %163 = vmatprep.subr.mxu0 %v186_v0 }
  0x12   :  { %164 = vmatpush3.msra.mxu0 %v21_v9 }
  0x13   :  { %165 = vmatprep.subr.mxu0 %v186_v0 }
  0x14   :  { %166 = vmatpush3.msra.mxu0 %v20_v10 }
  0x15   :  { %167 = vmatprep.subr.mxu0 %v186_v0 }
  0x16   :  { %168 = vmatpush3.msra.mxu0 %v19_v11 }
  0x17   :  { %169 = vmatprep.subr.mxu0 %v186_v0 }
  0x18   :  { %170 = vmatpush3.msra.mxu0 %v18_v12 }
  0x19   :  { %171 = vmatprep.subr.mxu0 %v186_v0 }
  0x1a   :  { %172 = vmatpush3.msra.mxu0 %v17_v13 }
  0x1b   :  { %173 = vmatprep.subr.mxu0 %v186_v0 }
  0x1c   :  { %174 = vmatpush3.msra.mxu0 %v16_v14 }
  0x1d   :  { %175 = vmatprep.subr.mxu0 %v186_v0 }
  0x1e   :  { %176 = vmatpush3.msra.mxu0 %v15_v15 }
  0x1f   :  { %178 = vmatmul.mubr.msk.f32.vlgmr.msra.gmra.mxu0 %vm37_vm1, %v14_v16 }
  0xdf   :  { %v107_v18 = vpop.f32.mrf.mxu0 }
  0xe0   :  { %v108_v19 = vadd.f32 %v129_v17, %v107_v18 }
  0xe1   :  { %v179_v20 = vpop.f32.mrf.mxu0 }
  0xe2   :  { %v112_v21 = vsel %vm111_vm2, %v108_v19, -inf }
  0xe3   :  { %113 = vmax.xlane.f32.xlu0 %v112_v21 }
 0x16c   :  { %v114_v22 = vpop.xlane.xlu0 %113 }
 0x16d   :  { %v115_v23 = vsub.f32 %v108_v19, %v114_v22 }
 0x16f   :  { %v116_v24 = vmul.f32 1.442695, %v115_v23 }
 0x171   :  { %182 = vpow2.f32 %v116_v24 }
 0x17e   :  { %v183_v25 = vpop.eup %182 }
 0x17f   :  { %v118_v26 = vsel %vm111_vm2, %v183_v25, 0.0 }
 0x180   :  { %119 = vadd.xlane.f32.xlu0 %v118_v26 }
 0x209   :  { %v120_v27 = vpop.xlane.xlu0 %119 }
 0x20a   :  { %184 = vlog2.f32 %v120_v27 }
 0x217   :  { %v185_v28 = vpop.eup %184 }
 0x218   :  { %v122_v29 = vmul.f32 0.6931472, %v185_v28 }
 0x21a   :  { %v123_v30 = vsub.f32 %v115_v23, %v122_v29 }
 0x21c   :  { %124 = vst.msk [vmem:[%s268_s3] sm:$0xff] %vm111_vm2, %v123_v30 }

</bundles_post_ra>
